<compile_context>
chip_gen: v6e
topology: v6e:2x2x1
jax: 0.10.0
libtpu: 0.0.40
codegen_flags: <defaults>
</compile_context>

<pallas_src>
import jax
import jax.numpy as jnp
from jax.experimental import pallas as pl
from jax.experimental.pallas import tpu as pltpu


def _round_up(n, m):
    return ((n + m - 1) // m) * m


# ---------------------------------------------------------------------------
# Kernel
# ---------------------------------------------------------------------------

def _build_kernel(latent, bias_offsets, bias_sizes):
    """Build the fused forward kernel with static dims baked in."""
    oe1, oe2, omulv, od1, od2, od3 = bias_offsets
    se1, se2, smulv, sd1, sd2, sd3 = bias_sizes

    def kernel(x_ref, noise_ref,
               we1, we2, wmulv, wd1, wd2, wd3, bias_ref,
               y_ref, stats_ref):
        def dense(a, w_ref, boff, bsize, act):
            # bf16 operands into the MXU, f32 accumulation, f32 bias/activation.
            y = jnp.dot(a.astype(w_ref.dtype), w_ref[...],
                        preferred_element_type=jnp.float32)
            y = y + bias_ref[:, boff:boff + bsize]
            return jnp.maximum(y, 0.0) if act else y

        x = x_ref[...]                              # already bf16 (cast in wrapper)

        # ---- encoder ----
        h = dense(x, we1, oe1, se1, act=True)
        h = dense(h, we2, oe2, se2, act=True)
        head = dense(h, wmulv, omulv, smulv, act=False)   # [tb, 2*latent] = [mu|logvar]
        mu = head[:, :latent]
        logvar = head[:, latent:]

        # ---- reparameterize: z = eps * exp(0.5*logvar) + mu  (f32) ----
        z = noise_ref[...] * jnp.exp(0.5 * logvar) + mu

        # ---- decoder (hidden sizes reversed) ----
        d = dense(z, wd1, od1, sd1, act=True)
        d = dense(d, wd2, od2, sd2, act=True)
        y = dense(d, wd3, od3, sd3, act=False)

        y_ref[...] = y.astype(y_ref.dtype)

        # Single lane-dense store for z | mu | logvar (head is already [mu|logvar]).
        pad = stats_ref.shape[-1] - 3 * latent
        parts = [z, head]
        if pad:
            parts.append(jnp.zeros((z.shape[0], pad), jnp.float32))
        stats_ref[...] = jnp.concatenate(parts, axis=-1).astype(stats_ref.dtype)

    return kernel


# ---------------------------------------------------------------------------
# Wrapper
# ---------------------------------------------------------------------------

def _const_spec(a):
    """Grid-invariant (VMEM-resident) operand; single-buffered when supported."""
    idx = lambda i: (0,) * a.ndim
    try:
        return pl.BlockSpec(a.shape, idx, pipeline_mode=pl.Buffered(1))
    except (AttributeError, TypeError):
        return pl.BlockSpec(a.shape, idx)


def _pack_biases(biases):
    """Pack bias vectors into one lane-aligned (1, total) f32 slab.

    Each segment starts at a multiple of 128 lanes so in-kernel static slices
    are lane-aligned."""
    segs, offsets = [], []
    off = 0
    for b in biases:
        n = int(b.shape[-1])
        padded = _round_up(n, 128)
        segs.append(jnp.pad(b.reshape(1, n).astype(jnp.float32),
                            ((0, 0), (0, padded - n))))
        offsets.append(off)
        off += padded
    return jnp.concatenate(segs, axis=-1), tuple(offsets)


def _pick_tile(B, tile_b, vmem_need_fn, budget):
    """Largest multiple-of-8 tile <= tile_b that divides round_up(B, 8) and
    whose VMEM footprint fits the budget (padding waste < 8 rows)."""
    tile_b = max(8, (tile_b // 8) * 8)
    B8 = _round_up(B, 8)
    cap = min(tile_b, B8)
    cands = [d for d in range(8, cap + 1, 8) if B8 % d == 0]
    if not cands:
        cands = [cap]
    for tb in sorted(set(cands), reverse=True):
        if vmem_need_fn(tb) <= budget:
            return tb
    return min(cands)


def gene_vae_forward(x, noise, params, *, tile_b=256,
                     vmem_budget=48 * 1024 * 1024):
    """x: [B, input_size] f32, noise: [B, latent_size] f32 (standard normal).

    Returns (z, y, mu, logvar).

    tile_b: batch rows per grid step. Default 256 fills the v6e/v7x MXU M dim;
    use 128 on v5e (4x128^2 MXU, single vector-store slot). On v7x, pick a
    batch/tile combination giving >= 2 grid steps so the "parallel" axis can
    shard across both TensorCores."""
    B, input_size = x.shape
    latent = noise.shape[1]
    h1 = params["we1"].shape[1]
    h2 = params["we2"].shape[1]
    output_size = params["wd3"].shape[1]
    stats_w = _round_up(3 * latent, 128)   # lane-dense slab for z|mu|logvar

    # Feed x to the kernel in the MXU dtype (halves the dominant HBM read).
    w_dtype = params["we1"].dtype
    x = x.astype(w_dtype)

    weights = [params["we1"], params["we2"], params["wmulv"],
               params["wd1"], params["wd2"], params["wd3"]]
    bias_slab, bias_offsets = _pack_biases(
        [params["be1"], params["be2"], params["bmulv"],
         params["bd1"], params["bd2"], params["bd3"]])
    bias_sizes = (h1, h2, 2 * latent, h2, h1, output_size)

    const_bytes = (sum(int(a.size) * a.dtype.itemsize for a in weights)
                   + int(bias_slab.size) * 4)

    def vmem_need(tb):
        act_in = 2 * tb * (input_size * x.dtype.itemsize + latent * 4)   # double-buffered
        act_out = 2 * tb * (output_size + stats_w) * 4                   # double-buffered
        interm = 2 * tb * (h1 + h2 + 3 * latent + h2 + h1) * 4           # live temporaries
        return const_bytes + act_in + act_out + interm

    tb = _pick_tile(B, tile_b, vmem_need, vmem_budget)
    Bp = _round_up(B, tb)
    if Bp != B:
        x = jnp.pad(x, ((0, Bp - B), (0, 0)))
        noise = jnp.pad(noise, ((0, Bp - B), (0, 0)))

    # Only raise the scoped VMEM limit when actually needed; cap with headroom
    # for compiler scratch so the same config still fits v7x's 64 MiB.
    need = vmem_need(tb)
    vmem_limit = None
    if need * 3 // 2 + (2 << 20) > (32 << 20):
        vmem_limit = min(need * 3 // 2 + (4 << 20), 56 << 20)

    def row_spec(f):
        return pl.BlockSpec((tb, f), lambda i: (i, 0))

    in_specs = ([row_spec(input_size), row_spec(latent)]
                + [_const_spec(a) for a in weights]
                + [_const_spec(bias_slab)])
    out_shape = (
        jax.ShapeDtypeStruct((Bp, output_size), jnp.float32),  # reconstruction
        jax.ShapeDtypeStruct((Bp, stats_w), jnp.float32),      # [z|mu|logvar|pad]
    )
    out_specs = (row_spec(output_size), row_spec(stats_w))

    # Advisory cost estimate (flops = 2*M*K*N summed over the 6 matmuls).
    dims = [(input_size, h1), (h1, h2), (h2, 2 * latent),
            (latent, h2), (h2, h1), (h1, output_size)]
    flops = 2 * Bp * sum(a * b for a, b in dims)
    bytes_accessed = int(
        x.size * x.dtype.itemsize + noise.size * 4
        + const_bytes
        + (Bp * output_size + Bp * stats_w) * 4)
    cost = pl.CostEstimate(flops=flops, transcendentals=Bp * latent,
                           bytes_accessed=bytes_accessed)

    kernel = _build_kernel(latent, bias_offsets, bias_sizes)

    y, stats = pl.pallas_call(
        kernel,
        out_shape=out_shape,
        grid=(Bp // tb,),
        in_specs=in_specs,
        out_specs=out_specs,
        compiler_params=pltpu.CompilerParams(
            dimension_semantics=("parallel",),
            vmem_limit_bytes=vmem_limit),
        cost_estimate=cost,
    )(x, noise, *weights, bias_slab)

    z = stats[:B, :latent]
    mu = stats[:B, latent:2 * latent]
    logvar = stats[:B, 2 * latent:3 * latent]
    return z, y[:B], mu, logvar


# ---------------------------------------------------------------------------
# Params / reference
# ---------------------------------------------------------------------------

def _linear_init(key, fan_in, fan_out, w_dtype):
    """Mimic nn.Linear default init: U(-1/sqrt(fan_in), 1/sqrt(fan_in)).
    W is returned as [fan_in, fan_out] (already transposed for x @ W)."""
    kw, kb = jax.random.split(key)
    bound = 1.0 / float(fan_in) ** 0.5
    w = jax.random.uniform(kw, (fan_in, fan_out), jnp.float32, -bound, bound)
    b = jax.random.uniform(kb, (1, fan_out), jnp.float32, -bound, bound)
    return w.astype(w_dtype), b   # weights in MXU dtype, biases stay f32


def make_params(key, input_size, hidden_sizes, latent_size, output_size,
                w_dtype=jnp.bfloat16):
    h1, h2 = hidden_sizes
    keys = jax.random.split(key, 7)
    we1, be1 = _linear_init(keys[0], input_size, h1, w_dtype)
    we2, be2 = _linear_init(keys[1], h1, h2, w_dtype)
    wmu, bmu = _linear_init(keys[2], h2, latent_size, w_dtype)
    wlv, blv = _linear_init(keys[3], h2, latent_size, w_dtype)
    # decoder uses reversed hidden sizes: latent -> h2 -> h1 -> output
    wd1, bd1 = _linear_init(keys[4], latent_size, h2, w_dtype)
    wd2, bd2 = _linear_init(keys[5], h2, h1, w_dtype)
    wd3, bd3 = _linear_init(keys[6], h1, output_size, w_dtype)
    return dict(
        we1=we1, be1=be1, we2=we2, be2=be2,
        wmulv=jnp.concatenate([wmu, wlv], axis=1),
        bmulv=jnp.concatenate([bmu, blv], axis=1),
        wd1=wd1, bd1=bd1, wd2=wd2, bd2=bd2, wd3=wd3, bd3=bd3)


def gene_vae_reference(x, noise, p):
    """Plain-JAX reference with identical numerics (bf16 MXU operands)."""
    relu = lambda t: jnp.maximum(t, 0.0)

    def dense(a, w, b):
        return jnp.dot(a.astype(w.dtype), w,
                       preferred_element_type=jnp.float32) + b

    latent = noise.shape[1]
    h = relu(dense(x, p["we1"], p["be1"]))
    h = relu(dense(h, p["we2"], p["be2"]))
    head = dense(h, p["wmulv"], p["bmulv"])
    mu, logvar = head[:, :latent], head[:, latent:]
    z = noise * jnp.exp(0.5 * logvar) + mu
    d = relu(dense(z, p["wd1"], p["bd1"]))
    d = relu(dense(d, p["wd2"], p["bd2"]))
    y = dense(d, p["wd3"], p["bd3"])
    return z, y, mu, logvar


if __name__ == "__main__":
    # GeneVAE(input_size, hidden_sizes, latent_size, output_size,
    #         activation_fn=ReLU, dropout=0.0) at small shapes.
    batch = 32
    input_size = 256
    hidden_sizes = [128, 64]
    latent_size = 32
    output_size = 256

    key = jax.random.PRNGKey(0)
    kx, knoise, kparams = jax.random.split(key, 3)

    x = jax.random.normal(kx, (batch, input_size), jnp.float32)
    noise = jax.random.normal(knoise, (batch, latent_size), jnp.float32)
    params = make_params(kparams, input_size, hidden_sizes, latent_size,
                         output_size)

    # Default tile picker runs the whole 32-row batch as a single grid step
    # (feeds all MXU rows, no per-step pipeline overhead at this size).
    z, y, mu, logvar = gene_vae_forward(x, noise, params)
    jax.block_until_ready((z, y, mu, logvar))

    z_ref, y_ref, mu_ref, lv_ref = gene_vae_reference(x, noise, params)
    assert z.shape == (batch, latent_size) and y.shape == (batch, output_size)
    assert jnp.allclose(mu, mu_ref, atol=1e-2, rtol=1e-2)
    assert jnp.allclose(logvar, lv_ref, atol=1e-2, rtol=1e-2)
    assert jnp.allclose(z, z_ref, atol=1e-2, rtol=1e-2)
    assert jnp.allclose(y, y_ref, atol=1e-2, rtol=1e-2)

    print("KERNEL_OK")
</pallas_src>

<mosaic_0001>
module attributes {stable_mosaic.version = 11 : i64} {
  func.func @kernel(%arg0: i32, %arg1: memref<32x256xbf16, #tpu.memory_space<vmem>>, %arg2: memref<32x32xf32, #tpu.memory_space<vmem>>, %arg3: memref<256x128xbf16, #tpu.memory_space<vmem>>, %arg4: memref<128x64xbf16, #tpu.memory_space<vmem>>, %arg5: memref<64x64xbf16, #tpu.memory_space<vmem>>, %arg6: memref<32x64xbf16, #tpu.memory_space<vmem>>, %arg7: memref<64x128xbf16, #tpu.memory_space<vmem>>, %arg8: memref<128x256xbf16, #tpu.memory_space<vmem>>, %arg9: memref<1x896xf32, #tpu.memory_space<vmem>>, %arg10: memref<32x256xf32, #tpu.memory_space<vmem>>, %arg11: memref<32x128xf32, #tpu.memory_space<vmem>>) attributes {dimension_semantics = [#tpu.dimension_semantics<parallel>], iteration_bounds = array<i64: 1>, scalar_prefetch = 0 : i64, scratch_operands = 0 : i64, tpu.core_type = #tpu.core_type<tc>, window_params = [{transform_indices = @transform_0, window_bounds = array<i64: 32, 256>}, {transform_indices = @transform_1, window_bounds = array<i64: 32, 32>}, {pipeline_mode = #tpu.pipeline_mode<synchronous>, transform_indices = @transform_2, window_bounds = array<i64: 256, 128>}, {pipeline_mode = #tpu.pipeline_mode<synchronous>, transform_indices = @transform_3, window_bounds = array<i64: 128, 64>}, {pipeline_mode = #tpu.pipeline_mode<synchronous>, transform_indices = @transform_4, window_bounds = array<i64: 64, 64>}, {pipeline_mode = #tpu.pipeline_mode<synchronous>, transform_indices = @transform_5, window_bounds = array<i64: 32, 64>}, {pipeline_mode = #tpu.pipeline_mode<synchronous>, transform_indices = @transform_6, window_bounds = array<i64: 64, 128>}, {pipeline_mode = #tpu.pipeline_mode<synchronous>, transform_indices = @transform_7, window_bounds = array<i64: 128, 256>}, {pipeline_mode = #tpu.pipeline_mode<synchronous>, transform_indices = @transform_8, window_bounds = array<i64: 1, 896>}, {transform_indices = @transform_9, window_bounds = array<i64: 32, 256>}, {transform_indices = @transform_10, window_bounds = array<i64: 32, 128>}]} {
    %c0 = arith.constant 0 : index
    %c0_0 = arith.constant 0 : index
    %0 = vector.load %arg1[%c0, %c0_0] : memref<32x256xbf16, #tpu.memory_space<vmem>>, vector<32x256xbf16>
    %c0_1 = arith.constant 0 : index
    %c0_2 = arith.constant 0 : index
    %1 = vector.load %arg3[%c0_1, %c0_2] : memref<256x128xbf16, #tpu.memory_space<vmem>>, vector<256x128xbf16>
    %cst = arith.constant dense<0.000000e+00> : vector<32x128xf32>
    %2 = tpu.matmul %0, %1, %cst {dimension_numbers = #tpu.dot_dimension_numbers<[1], [0], [0], [1], [0, 0, 1, 1], [], []>} : vector<32x256xbf16>, vector<256x128xbf16>, vector<32x128xf32> -> vector<32x128xf32>
    %c0_3 = arith.constant 0 : index
    %c0_4 = arith.constant 0 : index
    %3 = vector.load %arg9[%c0_3, %c0_4] : memref<1x896xf32, #tpu.memory_space<vmem>>, vector<1x128xf32>
    %4 = vector.broadcast %3 : vector<1x128xf32> to vector<32x128xf32>
    %5 = arith.addf %2, %4 : vector<32x128xf32>
    %cst_5 = arith.constant 0.000000e+00 : f32
    %6 = vector.broadcast %cst_5 : f32 to vector<32x128xf32>
    %7 = arith.maximumf %5, %6 : vector<32x128xf32>
    %8 = arith.truncf %7 : vector<32x128xf32> to vector<32x128xbf16>
    %c0_6 = arith.constant 0 : index
    %c0_7 = arith.constant 0 : index
    %9 = vector.load %arg4[%c0_6, %c0_7] : memref<128x64xbf16, #tpu.memory_space<vmem>>, vector<128x64xbf16>
    %cst_8 = arith.constant dense<0.000000e+00> : vector<32x64xf32>
    %10 = tpu.matmul %8, %9, %cst_8 {dimension_numbers = #tpu.dot_dimension_numbers<[1], [0], [0], [1], [0, 0, 1, 1], [], []>} : vector<32x128xbf16>, vector<128x64xbf16>, vector<32x64xf32> -> vector<32x64xf32>
    %c0_9 = arith.constant 0 : index
    %c128 = arith.constant 128 : index
    %11 = vector.load %arg9[%c0_9, %c128] : memref<1x896xf32, #tpu.memory_space<vmem>>, vector<1x64xf32>
    %12 = vector.broadcast %11 : vector<1x64xf32> to vector<32x64xf32>
    %13 = arith.addf %10, %12 : vector<32x64xf32>
    %cst_10 = arith.constant 0.000000e+00 : f32
    %14 = vector.broadcast %cst_10 : f32 to vector<32x64xf32>
    %15 = arith.maximumf %13, %14 : vector<32x64xf32>
    %16 = arith.truncf %15 : vector<32x64xf32> to vector<32x64xbf16>
    %c0_11 = arith.constant 0 : index
    %c0_12 = arith.constant 0 : index
    %17 = vector.load %arg5[%c0_11, %c0_12] : memref<64x64xbf16, #tpu.memory_space<vmem>>, vector<64x64xbf16>
    %cst_13 = arith.constant dense<0.000000e+00> : vector<32x64xf32>
    %18 = tpu.matmul %16, %17, %cst_13 {dimension_numbers = #tpu.dot_dimension_numbers<[1], [0], [0], [1], [0, 0, 1, 1], [], []>} : vector<32x64xbf16>, vector<64x64xbf16>, vector<32x64xf32> -> vector<32x64xf32>
    %c0_14 = arith.constant 0 : index
    %c256 = arith.constant 256 : index
    %19 = vector.load %arg9[%c0_14, %c256] : memref<1x896xf32, #tpu.memory_space<vmem>>, vector<1x64xf32>
    %20 = vector.broadcast %19 : vector<1x64xf32> to vector<32x64xf32>
    %21 = arith.addf %18, %20 : vector<32x64xf32>
    %22 = vector.extract_strided_slice %21 {offsets = [0, 0], sizes = [32, 32], strides = [1, 1]} : vector<32x64xf32> to vector<32x32xf32>
    %23 = vector.extract_strided_slice %21 {offsets = [0, 32], sizes = [32, 32], strides = [1, 1]} : vector<32x64xf32> to vector<32x32xf32>
    %c0_15 = arith.constant 0 : index
    %c0_16 = arith.constant 0 : index
    %24 = vector.load %arg2[%c0_15, %c0_16] : memref<32x32xf32, #tpu.memory_space<vmem>>, vector<32x32xf32>
    %cst_17 = arith.constant 5.000000e-01 : f32
    %25 = vector.broadcast %cst_17 : f32 to vector<32x32xf32>
    %26 = arith.mulf %25, %23 : vector<32x32xf32>
    %27 = math.exp %26 : vector<32x32xf32>
    %28 = arith.mulf %24, %27 : vector<32x32xf32>
    %29 = arith.addf %28, %22 : vector<32x32xf32>
    %30 = arith.truncf %29 : vector<32x32xf32> to vector<32x32xbf16>
    %c0_18 = arith.constant 0 : index
    %c0_19 = arith.constant 0 : index
    %31 = vector.load %arg6[%c0_18, %c0_19] : memref<32x64xbf16, #tpu.memory_space<vmem>>, vector<32x64xbf16>
    %cst_20 = arith.constant dense<0.000000e+00> : vector<32x64xf32>
    %32 = tpu.matmul %30, %31, %cst_20 {dimension_numbers = #tpu.dot_dimension_numbers<[1], [0], [0], [1], [0, 0, 1, 1], [], []>} : vector<32x32xbf16>, vector<32x64xbf16>, vector<32x64xf32> -> vector<32x64xf32>
    %c0_21 = arith.constant 0 : index
    %c384 = arith.constant 384 : index
    %33 = vector.load %arg9[%c0_21, %c384] : memref<1x896xf32, #tpu.memory_space<vmem>>, vector<1x64xf32>
    %34 = vector.broadcast %33 : vector<1x64xf32> to vector<32x64xf32>
    %35 = arith.addf %32, %34 : vector<32x64xf32>
    %cst_22 = arith.constant 0.000000e+00 : f32
    %36 = vector.broadcast %cst_22 : f32 to vector<32x64xf32>
    %37 = arith.maximumf %35, %36 : vector<32x64xf32>
    %38 = arith.truncf %37 : vector<32x64xf32> to vector<32x64xbf16>
    %c0_23 = arith.constant 0 : index
    %c0_24 = arith.constant 0 : index
    %39 = vector.load %arg7[%c0_23, %c0_24] : memref<64x128xbf16, #tpu.memory_space<vmem>>, vector<64x128xbf16>
    %cst_25 = arith.constant dense<0.000000e+00> : vector<32x128xf32>
    %40 = tpu.matmul %38, %39, %cst_25 {dimension_numbers = #tpu.dot_dimension_numbers<[1], [0], [0], [1], [0, 0, 1, 1], [], []>} : vector<32x64xbf16>, vector<64x128xbf16>, vector<32x128xf32> -> vector<32x128xf32>
    %c0_26 = arith.constant 0 : index
    %c512 = arith.constant 512 : index
    %41 = vector.load %arg9[%c0_26, %c512] : memref<1x896xf32, #tpu.memory_space<vmem>>, vector<1x128xf32>
    %42 = vector.broadcast %41 : vector<1x128xf32> to vector<32x128xf32>
    %43 = arith.addf %40, %42 : vector<32x128xf32>
    %cst_27 = arith.constant 0.000000e+00 : f32
    %44 = vector.broadcast %cst_27 : f32 to vector<32x128xf32>
    %45 = arith.maximumf %43, %44 : vector<32x128xf32>
    %46 = arith.truncf %45 : vector<32x128xf32> to vector<32x128xbf16>
    %c0_28 = arith.constant 0 : index
    %c0_29 = arith.constant 0 : index
    %47 = vector.load %arg8[%c0_28, %c0_29] : memref<128x256xbf16, #tpu.memory_space<vmem>>, vector<128x256xbf16>
    %cst_30 = arith.constant dense<0.000000e+00> : vector<32x256xf32>
    %48 = tpu.matmul %46, %47, %cst_30 {dimension_numbers = #tpu.dot_dimension_numbers<[1], [0], [0], [1], [0, 0, 1, 1], [], []>} : vector<32x128xbf16>, vector<128x256xbf16>, vector<32x256xf32> -> vector<32x256xf32>
    %c0_31 = arith.constant 0 : index
    %c640 = arith.constant 640 : index
    %49 = vector.load %arg9[%c0_31, %c640] : memref<1x896xf32, #tpu.memory_space<vmem>>, vector<1x256xf32>
    %50 = vector.broadcast %49 : vector<1x256xf32> to vector<32x256xf32>
    %51 = arith.addf %48, %50 : vector<32x256xf32>
    %c0_32 = arith.constant 0 : index
    %c0_33 = arith.constant 0 : index
    %52 = vector.load %arg10[%c0_32, %c0_33] : memref<32x256xf32, #tpu.memory_space<vmem>>, vector<32x256xf32>
    tpu.vector_store %arg10[%c0_32, %c0_33], %51 {strides = array<i32>} : memref<32x256xf32, #tpu.memory_space<vmem>>, vector<32x256xf32>,
    %cst_34 = arith.constant 0.000000e+00 : f32
    %53 = vector.broadcast %cst_34 : f32 to vector<32x32xf32>
    %54 = tpu.concatenate %29, %21, %53 in 1 : vector<32x32xf32>, vector<32x64xf32>, vector<32x32xf32> -> vector<32x128xf32>
    %c0_35 = arith.constant 0 : index
    %c0_36 = arith.constant 0 : index
    %55 = vector.load %arg11[%c0_35, %c0_36] : memref<32x128xf32, #tpu.memory_space<vmem>>, vector<32x128xf32>
    tpu.vector_store %arg11[%c0_35, %c0_36], %54 {strides = array<i32>} : memref<32x128xf32, #tpu.memory_space<vmem>>, vector<32x128xf32>,
    return
  }
  func.func @transform_0(%arg0: i32) -> (i32, i32) {
    %c0_i32 = arith.constant 0 : i32
    %c0_i32_0 = arith.constant 0 : i32
    return %arg0, %c0_i32 : i32, i32
  }
  func.func @transform_1(%arg0: i32) -> (i32, i32) {
    %c0_i32 = arith.constant 0 : i32
    %c0_i32_0 = arith.constant 0 : i32
    return %arg0, %c0_i32 : i32, i32
  }
  func.func @transform_2(%arg0: i32) -> (i32, i32) {
    %c0_i32 = arith.constant 0 : i32
    %c0_i32_0 = arith.constant 0 : i32
    %c0_i32_1 = arith.constant 0 : i32
    return %c0_i32, %c0_i32_0 : i32, i32
  }
  func.func @transform_3(%arg0: i32) -> (i32, i32) {
    %c0_i32 = arith.constant 0 : i32
    %c0_i32_0 = arith.constant 0 : i32
    %c0_i32_1 = arith.constant 0 : i32
    return %c0_i32, %c0_i32_0 : i32, i32
  }
  func.func @transform_4(%arg0: i32) -> (i32, i32) {
    %c0_i32 = arith.constant 0 : i32
    %c0_i32_0 = arith.constant 0 : i32
    %c0_i32_1 = arith.constant 0 : i32
    return %c0_i32, %c0_i32_0 : i32, i32
  }
  func.func @transform_5(%arg0: i32) -> (i32, i32) {
    %c0_i32 = arith.constant 0 : i32
    %c0_i32_0 = arith.constant 0 : i32
    %c0_i32_1 = arith.constant 0 : i32
    return %c0_i32, %c0_i32_0 : i32, i32
  }
  func.func @transform_6(%arg0: i32) -> (i32, i32) {
    %c0_i32 = arith.constant 0 : i32
    %c0_i32_0 = arith.constant 0 : i32
    %c0_i32_1 = arith.constant 0 : i32
    return %c0_i32, %c0_i32_0 : i32, i32
  }
  func.func @transform_7(%arg0: i32) -> (i32, i32) {
    %c0_i32 = arith.constant 0 : i32
    %c0_i32_0 = arith.constant 0 : i32
    %c0_i32_1 = arith.constant 0 : i32
    return %c0_i32, %c0_i32_0 : i32, i32
  }
  func.func @transform_8(%arg0: i32) -> (i32, i32) {
    %c0_i32 = arith.constant 0 : i32
    %c0_i32_0 = arith.constant 0 : i32
    %c0_i32_1 = arith.constant 0 : i32
    return %c0_i32, %c0_i32_0 : i32, i32
  }
  func.func @transform_9(%arg0: i32) -> (i32, i32) {
    %c0_i32 = arith.constant 0 : i32
    %c0_i32_0 = arith.constant 0 : i32
    return %arg0, %c0_i32 : i32, i32
  }
  func.func @transform_10(%arg0: i32) -> (i32, i32) {
    %c0_i32 = arith.constant 0 : i32
    %c0_i32_0 = arith.constant 0 : i32
    return %arg0, %c0_i32 : i32, i32
  }
}

</mosaic_0001>

<bundles_post_ra>
// kernel: tpu_custom_call.1
= control target key start
LH: loop header
LB: loop body
LE: loop exit
PB: predicated region body
PF: predicated region fallthrough
CT: control target
= control target key end

     0   :  { %16 = vsyncpa [#allocation3], 0  ;;  %s1561_s0 = inlined_call_operand.vmem [shape: bf16[32,256], index: 0, kind: input, shape index: {}]   ;;  %s1562_s1 = inlined_call_operand.vmem [shape: f32[32,32], index: 1, kind: input, shape index: {}]   ;;  %s1563_s2 = inlined_call_operand.hbm [shape: bf16[256,128], index: 2, kind: input, shape index: {}]   ;;  %s1564_s3 = inlined_call_operand.vmem [shape: bf16[128,64], index: 3, kind: input, shape index: {}]   ;;  %s1565_s4 = inlined_call_operand.vmem [shape: bf16[64,64], index: 4, kind: input, shape index: {}]   ;;  %s1566_s5 = inlined_call_operand.hbm [shape: bf16[32,64], index: 5, kind: input, shape index: {}]   ;;  %s1567_s6 = inlined_call_operand.hbm [shape: bf16[64,128], index: 6, kind: input, shape index: {}]   ;;  %s1568_s7 = inlined_call_operand.hbm [shape: bf16[128,256], index: 7, kind: input, shape index: {}]   ;;  %s1569_s8 = inlined_call_operand.vmem [shape: f32[1,896], index: 8, kind: input, shape index: {}]   ;;  %s1570_s9 = inlined_call_operand.hbm [shape: f32[32,256], index: 9, kind: output, shape index: {0}]   ;;  %s1571_s10 = inlined_call_operand.hbm [shape: f32[32,128], index: 10, kind: output, shape index: {1}]  }
   0x1   :  { %17 = vsyncpa [#allocation6], 0 }
   0x2   :  { %18 = vsyncpa [#allocation9], 0 }
   0x3   :  { %19 = vsyncpa [#allocation4], 0 }
   0x4   :  { %20 = vsyncpa [#allocation12], 0  ;;  %s1375_s13 = smov [#allocation5]   ;;  %s1376_s15 = smov [#allocation2]  }
   0x5   :  { %s46_s14 = sshll.u32 %s1375_s13, 4  ;;  %s30_s16 = sshll.u32 %s1376_s15, 4  ;;  %s47_s14 = int_to_ptr.vmem [resolvable:$true] %s46_s14  ;;  %s31_s16 = int_to_ptr.vmem [resolvable:$true] %s30_s16 }
   0x6   :  { %s1253_s17 = scalar_lea.vmem %s47_s14, 256  ;;  %p1258_p1 = scmp.lt.s32.totalorder %s47_s14, %s47_s14 }
   0x7   :  { %p1254_p0 = scmp.ne.s32.totalorder %s47_s14, %s1253_s17  ;;  %p1259_p2 = scmp.lt.s32.totalorder %s1253_s17, %s1253_s17 }
   0x9   :  { %p1260_p3 = por %p1259_p2, %p1258_p1 }
   0xb   :  { %p1261_p4 = pnand %p1260_p3, %p1254_p0 }
   0xd   :  { %1264 = shalt.err (!%p1261_p4)
}
   0xe   :  { %s1377_s18 = smov 64   ;;  %s1378_s19 = smov 4  }
   0xf   :  { %52 = dma.hbm_to_vmem [thread:$0]  %s1566_s5, 256, %s47_s14, [#allocation6], %s1377_s18, %s1377_s18, %s1378_s19  }
  0x10   :  { %s1273_s22 = scalar_lea.vmem %s31_s16, 2048  ;;  %p1278_p6 = scmp.lt.s32.totalorder %s31_s16, %s31_s16 }
  0x11   :  { %p1274_p5 = scmp.ne.s32.totalorder %s31_s16, %s1273_s22  ;;  %p1279_p7 = scmp.lt.s32.totalorder %s1273_s22, %s1273_s22 }
  0x13   :  { %p1280_p8 = por %p1279_p7, %p1278_p6 }
  0x15   :  { %p1281_p9 = pnand %p1280_p8, %p1274_p5 }
  0x17   :  { %1284 = shalt.err (!%p1281_p9)
}
  0x18   :  { %36 = dma.hbm_to_vmem [thread:$0]  %s1563_s2, 2048, %s31_s16, [#allocation3], %s1377_s18, %s1377_s18, %s1378_s19  }
  0x19   :  { %s1379_s25 = smov [#allocation7]   ;;  %s1380_s27 = smov [#allocation8]  }
  0x1a   :  { %s58_s26 = sshll.u32 %s1379_s25, 4  ;;  %s70_s28 = sshll.u32 %s1380_s27, 4  ;;  %s59_s26 = int_to_ptr.vmem [resolvable:$true] %s58_s26  ;;  %s71_s28 = int_to_ptr.vmem [resolvable:$true] %s70_s28 }
  0x1b   :  { %s1293_s29 = scalar_lea.vmem %s59_s26, 512  ;;  %p1298_p11 = scmp.lt.s32.totalorder %s59_s26, %s59_s26 }
  0x1c   :  { %p1294_p10 = scmp.ne.s32.totalorder %s59_s26, %s1293_s29  ;;  %p1299_p12 = scmp.lt.s32.totalorder %s1293_s29, %s1293_s29 }
  0x1e   :  { %p1300_p13 = por %p1299_p12, %p1298_p11 }
  0x20   :  { %p1301_p0 = pnand %p1300_p13, %p1294_p10 }
  0x22   :  { %1304 = shalt.err (!%p1301_p0)
}
  0x23   :  { %64 = dma.hbm_to_vmem [thread:$0]  %s1567_s6, 512, %s59_s26, [#allocation6], %s1377_s18, %s1377_s18, %s1378_s19  }
  0x24   :  { %s1313_s11 = scalar_lea.vmem %s71_s28, 2048  ;;  %p1318_p2 = scmp.lt.s32.totalorder %s71_s28, %s71_s28 }
  0x25   :  { %p1314_p1 = scmp.ne.s32.totalorder %s71_s28, %s1313_s11  ;;  %p1319_p3 = scmp.lt.s32.totalorder %s1313_s11, %s1313_s11 }
  0x27   :  { %p1320_p4 = por %p1319_p3, %p1318_p2 }
  0x29   :  { %p1321_p5 = pnand %p1320_p4, %p1314_p1 }
  0x2b   :  { %1324 = shalt.err (!%p1321_p5)
}
  0x2c   :  { %s1381_s2 = smov 128   ;;  %s1382_s12 = smov 8  }
  0x2d   :  { %76 = dma.hbm_to_vmem [thread:$0]  %s1568_s7, 2048, %s71_s28, [#allocation9], %s1381_s2, %s1381_s2, %s1382_s12  }
  0x2e   :  { %1365 = dma.done.wait [#allocation3], 2048  }
  0x2f   :  { %1366 = vsyncadd [#allocation3], 4294965248 }
  0x30   :  { %1367 = dma.done.wait [#allocation6], 768  }
  0x31   :  { %1368 = vsyncadd [#allocation6], 4294966528 }
  0x32   :  { %1369 = dma.done.wait [#allocation9], 2048  }
  0x33   :  { %1370 = vsyncadd [#allocation9], 4294965248  ;;  %v1173_v0 = vld [vmem:[#allocation2 + $0x78] sm:$0xff]   ;;  %v1175_v2 = vld [vmem:[#allocation2 + $0x70] sm:$0xff]   ;;  %vm471_vm0 = vcmask 523264   ;;  %s1383_s26 = smov 96  }
  0x34   :  { %v1174_v1 = vld [vmem:[#allocation2 + $0x38] sm:$0xff]   ;;  %1052 = vmatprep.subr.bf16.mxu0 %v1173_v0  ;;  %v1176_v3 = vld [vmem:[#allocation2 + $0x30] sm:$0xff]   ;;  %v1177_v4 = vld [vmem:[#allocation2 + $0x68] sm:$0xff]   ;;  %s1384_s27 = smov 32   ;;  %vm592_vm1 = vcmask 261120   ;;  %vm943_vm2 = vcmask 785408  }
  0x35   :  { %1053 = vmatpush3.bf16.msra.mxu0 %v1174_v1  ;;  %v1178_v5 = vld [vmem:[#allocation2 + $0x28] sm:$0xff]   ;;  %v1179_v6 = vld [vmem:[#allocation2 + $0x60] sm:$0xff]   ;;  %v1181_v8 = vld [vmem:[#allocation2 + $0x58] sm:$0xff]   ;;  %s1386_s16 = smov [#allocation11]  }
  0x36   :  { %1054 = vmatprep.subr.bf16.mxu0 %v1175_v2  ;;  %v1180_v7 = vld [vmem:[#allocation2 + $0x20] sm:$0xff]   ;;  %v1182_v9 = vld [vmem:[#allocation2 + $0x18] sm:$0xff]   ;;  %v1183_v10 = vld [vmem:[#allocation2 + $0x50] sm:$0xff]   ;;  %s969_s17 = sshll.u32 %s1386_s16, 4  ;;  %s970_s17 = int_to_ptr.vmem [resolvable:$true] %s969_s17 }
  0x37   :  { %v1191_v11 = vld [vmem:[%s1561_s0 + $0x4] ss:$8 sps:$4 sm:$0xff]   ;;  %v1184_v12 = vld [vmem:[#allocation2 + $0x10] sm:$0xff]   ;;  %v1195_v14 = vld [vmem:[%s1564_s3 + $0x38] sm:$0xff]   ;;  %p1330_p7 = scmp.lt.s32.totalorder %s970_s17, %s970_s17 }
  0x38   :  { %v1185_v13 = vld [vmem:[#allocation2 + $0x48] sm:$0xff]   ;;  %283 = vmatprep.mubr.bf16.mxu0 %v1191_v11  ;;  %v1196_v15 = vld [vmem:[%s1564_s3 + $0x30] sm:$0xff]   ;;  %1106 = vmatprep.subr.bf16.mxu1 %v1195_v14  ;;  %v1187_v18 = vld [vmem:[#allocation2 + $0x40] sm:$0xff]  }
  0x39   :  { %1055 = vmatpush3.bf16.msra.mxu0 %v1176_v3  ;;  %v1186_v16 = vld [vmem:[#allocation2 + $0x8] sm:$0xff]   ;;  %1107 = vmatpush3.bf16.msra.mxu1 %v1195_v14  ;;  %v1188_v19 = vld [vmem:[#allocation2] sm:$0xff]   ;;  %v1192_v21 = vld [vmem:[%s1561_s0 + $0x14] ss:$8 sps:$4 sm:$0xff]  }
  0x3a   :  { %1056 = vmatprep.subr.bf16.mxu0 %v1177_v4  ;;  %v1197_v17 = vld [vmem:[%s1564_s3 + $0x28] sm:$0xff]   ;;  %1108 = vmatprep.subr.bf16.mxu1 %v1196_v15  ;;  %v1194_v22 = vld [vmem:[%s1561_s0 + $0x10] ss:$8 sps:$4 sm:$0xff]   ;;  %v1198_v23 = vld [vmem:[%s1564_s3 + $0x20] sm:$0xff]  }
  0x3b   :  { %v1189_v20 = vld [vmem:[%s1561_s0] ss:$8 sps:$4 sm:$0xff]   ;;  %v1199_v24 = vld [vmem:[%s1564_s3 + $0x18] sm:$0xff]   ;;  %v1200_v25 = vld [vmem:[%s1564_s3 + $0x10] sm:$0xff]  }
  0x3c   :  { %v1201_v26 = vld [vmem:[%s1564_s3 + $0x8] sm:$0xff]   ;;  %v1202_v27 = vld [vmem:[%s1564_s3] sm:$0xff]   ;;  %v1203_v28 = vld [vmem:[%s1565_s4 + $0x18] sm:$0xff]   ;;  %s1325_s3 = scalar_lea.vmem %s970_s17, 512 }
  0x3d   :  { %1057 = vmatpush3.bf16.msra.mxu0 %v1178_v5  ;;  %1109 = vmatpush3.bf16.msra.mxu1 %v1196_v15  ;;  %v987_v33 = vld [vmem:[%s1569_s8] ss:$0 sm:$0xff]  ;;  %v1204_v52 = vld [vmem:[%s1565_s4 + $0x10] sm:$0xff]   ;;  %v1205_v53 = vld [vmem:[%s1565_s4 + $0x8] sm:$0xff]   ;;  %p1326_p6 = scmp.ne.s32.totalorder %s970_s17, %s1325_s3  ;;  %p1331_p8 = scmp.lt.s32.totalorder %s1325_s3, %s1325_s3 }
  0x3e   :  { %1058 = vmatprep.subr.bf16.mxu0 %v1179_v6  ;;  %1110 = vmatprep.subr.bf16.mxu1 %v1197_v17  ;;  %v1206_v54 = vld [vmem:[%s1565_s4] sm:$0xff]  }
  0x3f   :  { %v1008_v57 = vld [vmem:[%s1569_s8 + $0x1] ss:$0 sm:$0xff]  ;;  %v1017_v6 = vld [vmem:[%s1569_s8 + $0x2] ss:$0 sm:$0xff]  ;;  %p1332_p9 = por %p1331_p8, %p1330_p7 }
  0x41   :  { %1059 = vmatpush3.bf16.msra.mxu0 %v1180_v7  ;;  %1111 = vmatpush3.bf16.msra.mxu1 %v1197_v17  ;;  %p1333_p10 = pnand %p1332_p9, %p1326_p6 }
  0x42   :  { %1060 = vmatprep.subr.bf16.mxu0 %v1181_v8  ;;  %1112 = vmatprep.subr.bf16.mxu1 %v1198_v23 }
  0x45   :  { %1061 = vmatpush3.bf16.msra.mxu0 %v1182_v9  ;;  %1113 = vmatpush3.bf16.msra.mxu1 %v1198_v23  ;;  %v1207_v23 = vld [vmem:[#allocation5 + $0x8] sm:$0xff]  }
  0x46   :  { %1062 = vmatprep.subr.bf16.mxu0 %v1183_v10  ;;  %1114 = vmatprep.subr.bf16.mxu1 %v1199_v24 }
  0x49   :  { %1063 = vmatpush3.bf16.msra.mxu0 %v1184_v12  ;;  %1115 = vmatpush3.bf16.msra.mxu1 %v1199_v24  ;;  %v1208_v24 = vld [vmem:[#allocation5] sm:$0xff]  }
  0x4a   :  { %1064 = vmatprep.subr.bf16.mxu0 %v1185_v13  ;;  %1116 = vmatprep.subr.bf16.mxu1 %v1200_v25 }
  0x4d   :  { %1065 = vmatpush3.bf16.msra.mxu0 %v1186_v16  ;;  %1117 = vmatpush3.bf16.msra.mxu1 %v1200_v25 }
  0x4e   :  { %1066 = vmatprep.subr.bf16.mxu0 %v1187_v18  ;;  %1118 = vmatprep.subr.bf16.mxu1 %v1201_v26 }
  0x51   :  { %1067 = vmatpush3.bf16.msra.mxu0 %v1188_v19  ;;  %1119 = vmatpush3.bf16.msra.mxu1 %v1201_v26 }
  0x52   :  { %1120 = vmatprep.subr.bf16.mxu1 %v1202_v27 }
  0x54   :  { %284 = vmatmul.mubr.bf16.vlgmr.msra.gmra.mxu0 %v1189_v20 }
  0x55   :  { %291 = vmatprep.mubr.bf16.mxu0 %v1192_v21  ;;  %1121 = vmatpush3.bf16.msra.mxu1 %v1202_v27 }
  0x56   :  { %1126 = vmatprep.subr.bf16.mxu1 %v1203_v28 }
  0x5c   :  { %292 = vmatmul.mubr.bf16.gmra.mxu0 %v1194_v22 }
 0x114   :  { %v1068_v29 = vpop.f32.mrf.mxu0 }
 0x116   :  { %v1069_v30 = vpop.f32.mrf.mxu0 }
 0x117   :  { %v1070_v31 = vadd.f32 %v1069_v30, %v1068_v29 }
 0x118   :  { %v1071_v32 = vpop.f32.mrf.mxu0 }
 0x119   :  { %v286_v36 = vadd.f32 %v1070_v31, %v987_v33  ;;  %v527_v31 = vld [vmem:[%s1562_s1] sm:$0xff] }
 0x11a   :  { %v1072_v34 = vpop.f32.mrf.mxu0 }
 0x11b   :  { %v1073_v35 = vadd.f32 %v1072_v34, %v1071_v32  ;;  %v300_v41 = vmax.f32 %v286_v36, 0.0  ;;  %v529_v34 = vld [vmem:[%s1562_s1 + $0x10] sm:$0xff]  ;;  %v528_v36 = vld [vmem:[%s1562_s1 + $0x8] sm:$0xff] }
 0x11c   :  { %v1074_v37 = vpop.f32.mrf.mxu0 }
 0x11d   :  { %v289_v38 = vadd.f32 %v1073_v35, %v987_v33 }
 0x11e   :  { %v1075_v39 = vpop.f32.mrf.mxu0 }
 0x11f   :  { %v1076_v40 = vadd.f32 %v1075_v39, %v1074_v37  ;;  %v301_v42 = vmax.f32 %v289_v38, 0.0 }
 0x120   :  { %v1077_v43 = vpop.f32.mrf.mxu0 }
 0x121   :  { %v304_v44 = vpack.c.bf16 %v301_v42, %v300_v41  ;;  %v294_v46 = vadd.f32 %v1076_v40, %v987_v33 }
 0x122   :  { %v1078_v45 = vpop.f32.mrf.mxu0 }
 0x123   :  { %v1079_v47 = vadd.f32 %v1078_v45, %v1077_v43  ;;  %1122 = vmatprep.mubr.bf16.mxu1 %v304_v44  ;;  %v302_v49 = vmax.f32 %v294_v46, 0.0 }
 0x125   :  { %v297_v48 = vadd.f32 %v1079_v47, %v987_v33  ;;  %v530_v33 = vld [vmem:[%s1562_s1 + $0x18] sm:$0xff] }
 0x127   :  { %v303_v50 = vmax.f32 %v297_v48, 0.0 }
 0x129   :  { %v305_v51 = vpack.c.bf16 %v303_v50, %v302_v49 }
 0x12b   :  { %1123 = vmatmul.mubr.bf16.vlgmr.msra.gmra.mxu1 %v305_v51 }
 0x12c   :  { %1127 = vmatpush3.bf16.msra.mxu1 %v1203_v28  ;;  %v1209_v28 = vld [vmem:[#allocation7 + $0x18] sm:$0xff]  }
 0x12d   :  { %1128 = vmatprep.subr.bf16.mxu1 %v1204_v52 }
 0x130   :  { %1129 = vmatpush3.bf16.msra.mxu1 %v1204_v52 }
 0x131   :  { %1130 = vmatprep.subr.bf16.mxu1 %v1205_v53 }
 0x134   :  { %1131 = vmatpush3.bf16.msra.mxu1 %v1205_v53 }
 0x135   :  { %1132 = vmatprep.subr.bf16.mxu1 %v1206_v54 }
 0x138   :  { %1133 = vmatpush3.bf16.msra.mxu1 %v1206_v54 }
 0x139   :  { %1138 = vmatprep.subr.bf16.mxu1 %v1207_v23 }
 0x1eb   :  { %v1124_v55 = vpop.f32.mrf.mxu1 }
 0x1ec   :  { %v420_v61 = vadd.f32 %v1124_v55, %v1008_v57 }
 0x1ed   :  { %v411_v56 = vpop.f32.mrf.mxu1 }
 0x1ee   :  { %v412_v59 = vadd.f32 %v1008_v57, %v411_v56  ;;  %v428_v3 = vmax.f32 %v420_v61, 0.0  ;;  %v1211_v61 = vld [vmem:[#allocation7 + $0x8] sm:$0xff]  }
 0x1ef   :  { %v1125_v58 = vpop.f32.mrf.mxu1 }
 0x1f0   :  { %v423_v60 = vadd.f32 %v1125_v58, %v1008_v57  ;;  %v426_v1 = vmax.f32 %v412_v59, 0.0 }
 0x1f1   :  { %v414_v62 = vpop.f32.mrf.mxu1 }
 0x1f2   :  { %v415_v63 = vadd.f32 %v1008_v57, %v414_v62  ;;  %v429_v0 = vmax.f32 %v423_v60, 0.0  ;;  %v1210_v60 = vld [vmem:[#allocation7 + $0x10] sm:$0xff]   ;;  %v1212_v62 = vld [vmem:[#allocation7] sm:$0xff]  }
 0x1f4   :  { %v427_v2 = vmax.f32 %v415_v63, 0.0  ;;  %v431_v5 = vpack.c.bf16 %v429_v0, %v428_v3  ;;  %v1213_v63 = vld [vmem:[#allocation8 + $0x70] ss:$8 sps:$4 sm:$0xff]   ;;  %v1215_v0 = vld [vmem:[#allocation8 + $0x74] ss:$8 sps:$4 sm:$0xff]  }
 0x1f5   :  { %862 = vmatprep.subr.bf16.mxu0 %v1215_v0  ;;  %v1221_v3 = vld [vmem:[#allocation8 + $0x54] ss:$8 sps:$4 sm:$0xff]  }
 0x1f6   :  { %v430_v4 = vpack.c.bf16 %v427_v2, %v426_v1  ;;  %v1218_v1 = vld [vmem:[#allocation8 + $0x64] ss:$8 sps:$4 sm:$0xff]   ;;  %863 = vmatpush1.bf16.msra.mxu0 %v1213_v63  ;;  %v1216_v2 = vld [vmem:[#allocation8 + $0x60] ss:$8 sps:$4 sm:$0xff]  }
 0x1f7   :  { %864 = vmatprep.subr.bf16.mxu0 %v1218_v1 }
 0x1f8   :  { %1134 = vmatprep.mubr.msk.bf16.mxu1 %vm471_vm0, %v430_v4  ;;  %v1219_v4 = vld [vmem:[#allocation8 + $0x50] ss:$8 sps:$4 sm:$0xff]  }
 0x1f9   :  { %1135 = vmatmul.mubr.msk.bf16.vlgmr.msra.gmra.mxu1 %vm471_vm0, %v431_v5  ;;  %v1224_v5 = vld [vmem:[#allocation8 + $0x44] ss:$8 sps:$4 sm:$0xff]  }
 0x1fa   :  { %1139 = vmatpush3.bf16.msra.mxu1 %v1207_v23  ;;  %865 = vmatpush1.bf16.msra.mxu0 %v1216_v2 }
 0x1fb   :  { %1140 = vmatprep.subr.bf16.mxu1 %v1208_v24  ;;  %866 = vmatprep.subr.bf16.mxu0 %v1221_v3 }
 0x1fe   :  { %1141 = vmatpush3.bf16.msra.mxu1 %v1208_v24  ;;  %867 = vmatpush1.bf16.msra.mxu0 %v1219_v4  ;;  %v1230_v24 = vld [vmem:[#allocation8 + $0x24] ss:$8 sps:$4 sm:$0xff]  }
 0x1ff   :  { %1146 = vmatprep.subr.bf16.mxu1 %v1209_v28  ;;  %868 = vmatprep.subr.bf16.mxu0 %v1224_v5 }
 0x2b9   :  { %v1136_v7 = vpop.f32.mrf.mxu1 }
 0x2ba   :  { %v521_v8 = vadd.f32 %v1136_v7, %v1017_v6  ;;  %v1227_v7 = vld [vmem:[#allocation8 + $0x34] ss:$8 sps:$4 sm:$0xff]  }
 0x2bb   :  { %v512_v9 = vpop.f32.mrf.mxu1 }
 0x2bc   :  { %v533_v10 = vmul.f32 0.5, %v521_v8  ;;  %v513_v11 = vadd.f32 %v1017_v6, %v512_v9 }
 0x2bd   :  { %v1137_v12 = vpop.f32.mrf.mxu1 }
 0x2be   :  { %v539_v13 = vmul.f32 1.442695, %v533_v10  ;;  %v531_v14 = vmul.f32 0.5, %v513_v11  ;;  %v524_v15 = vadd.f32 %v1137_v12, %v1017_v6 }
 0x2bf   :  { %v515_v16 = vpop.f32.mrf.mxu1 }
 0x2c0   :  { %1237 = vpow2.f32 %v539_v13  ;;  %v535_v17 = vmul.f32 1.442695, %v531_v14  ;;  %v534_v18 = vmul.f32 0.5, %v524_v15  ;;  %v516_v19 = vadd.f32 %v1017_v6, %v515_v16  ;;  %v1222_v6 = vld [vmem:[#allocation8 + $0x40] ss:$8 sps:$4 sm:$0xff]  }
 0x2c1   :  { %869 = vmatpush1.bf16.msra.mxu0 %v1222_v6 }
 0x2c2   :  { %1239 = vpow2.f32 %v535_v17  ;;  %v541_v20 = vmul.f32 1.442695, %v534_v18  ;;  %v532_v21 = vmul.f32 0.5, %v516_v19  ;;  %870 = vmatprep.subr.bf16.mxu0 %v1227_v7 }
 0x2c4   :  { %1241 = vpow2.f32 %v541_v20  ;;  %v537_v22 = vmul.f32 1.442695, %v532_v21 }
 0x2c6   :  { %1243 = vpow2.f32 %v537_v22 }
 0x2cd   :  { %v1238_v25 = vpop.eup %1237 }
 0x2ce   :  { %551 = vrot.lane.b32.xlu1 %v1238_v25, %s1383_s26  ;;  %v1228_v25 = vld [vmem:[#allocation8 + $0x20] ss:$8 sps:$4 sm:$0xff]  }
 0x2cf   :  { %v1240_v26 = vpop.eup %1239 }
 0x2d0   :  { %547 = vrot.lane.b32.xlu0 %v1240_v26, %s1383_s26  ;;  %v1233_v26 = vld [vmem:[#allocation8 + $0x14] ss:$8 sps:$4 sm:$0xff]  }
 0x2d1   :  { %v1242_v27 = vpop.eup %1241 }
 0x2d2   :  { %553 = vrot.lane.b32.xlu1 %v1242_v27, %s1383_s26  ;;  %v1231_v27 = vld [vmem:[#allocation8 + $0x10] ss:$8 sps:$4 sm:$0xff]  }
 0x2d3   :  { %v1244_v29 = vpop.eup %1243 }
 0x2d4   :  { %549 = vrot.lane.b32.xlu0 %v1244_v29, %s1383_s26  ;;  %v1234_v29 = vld [vmem:[#allocation8] ss:$8 sps:$4 sm:$0xff]  }
 0x2d6   :  { %929 = vrot.lane.b32.xlu1 %v516_v19, %s1384_s27 }
 0x2d8   :  { %927 = vrot.lane.b32.xlu0 %v513_v11, %s1384_s27 }
 0x2da   :  { %933 = vrot.lane.b32.xlu1 %v524_v15, %s1384_s27 }
 0x2dc   :  { %931 = vrot.lane.b32.xlu0 %v521_v8, %s1384_s27 }
 0x340   :  { %v552_v30 = vpop.permute.xlu1 %551 }
 0x341   :  { %v561_v39 = vmul.f32 %v552_v30, %v529_v34  ;;  %v1385_v30 = vmov 0  }
 0x342   :  { %v548_v32 = vpop.permute.xlu0 %547  ;;  %894 = vmatprep.mubr.bf16.mxu0 %v1385_v30 }
 0x343   :  { %v559_v37 = vmul.f32 %v548_v32, %v527_v31  ;;  %v565_v46 = vadd.f32 %v561_v39, %v521_v8  ;;  %v1225_v8 = vld [vmem:[#allocation8 + $0x30] ss:$8 sps:$4 sm:$0xff]  }
 0x344   :  { %v554_v35 = vpop.permute.xlu1 %553  ;;  %871 = vmatpush1.bf16.msra.mxu0 %v1225_v8 }
 0x345   :  { %v562_v38 = vmul.f32 %v554_v35, %v530_v33  ;;  %v563_v44 = vadd.f32 %v559_v37, %v513_v11  ;;  %v1024_v11 = vld [vmem:[%s1569_s8 + $0x3] ss:$0 sm:$0xff]  ;;  %872 = vmatprep.subr.bf16.mxu0 %v1230_v24  ;;  %v1029_v33 = vld [vmem:[%s1569_s8 + $0x4] ss:$0 sm:$0xff] }
 0x346   :  { %v550_v40 = vpop.permute.xlu0 %549 }
 0x347   :  { %v560_v41 = vmul.f32 %v550_v40, %v528_v36  ;;  %v566_v42 = vadd.f32 %v562_v38, %v524_v15 }
 0x348   :  { %v930_v43 = vpop.permute.xlu1 %929  ;;  %873 = vmatpush1.bf16.msra.mxu0 %v1228_v25 }
 0x349   :  { %v564_v45 = vadd.f32 %v560_v41, %v516_v19  ;;  %v568_v51 = vpack.c.bf16 %v566_v42, %v565_v46  ;;  %874 = vmatprep.subr.bf16.mxu0 %v1233_v26 }
 0x34a   :  { %v928_v47 = vpop.permute.xlu0 %927 }
 0x34b   :  { %v567_v48 = vpack.c.bf16 %v564_v45, %v563_v44  ;;  %v940_v49 = vsel %vm592_vm1, %v564_v45, %v930_v43  ;;  %v939_v50 = vsel %vm592_vm1, %v563_v44, %v928_v47 }
 0x34c   :  { %v945_v52 = vsel %vm943_vm2, %v940_v49, 0.0  ;;  %v944_v53 = vsel %vm943_vm2, %v939_v50, 0.0  ;;  %v934_v54 = vpop.permute.xlu1 %933  ;;  %875 = vmatpush1.bf16.msra.mxu0 %v1231_v27 }
 0x34d   :  { %949 = vst [vmem:[#allocation11 + $0x8] sm:$0xff] %v945_v52  ;;  %948 = vst [vmem:[#allocation11] sm:$0xff] %v944_v53  ;;  %v942_v55 = vsel %vm592_vm1, %v566_v42, %v934_v54  ;;  %1142 = vmatprep.mubr.msk.bf16.mxu1 %vm592_vm1, %v567_v48 }
 0x34e   :  { %v947_v56 = vsel %vm943_vm2, %v942_v55, 0.0  ;;  %1143 = vmatmul.mubr.msk.bf16.vlgmr.msra.gmra.mxu1 %vm592_vm1, %v568_v51  ;;  %v932_v57 = vpop.permute.xlu0 %931 }
 0x34f   :  { %951 = vst [vmem:[#allocation11 + $0x18] sm:$0xff] %v947_v56  ;;  %v941_v58 = vsel %vm592_vm1, %v565_v46, %v932_v57  ;;  %1147 = vmatpush3.bf16.msra.mxu1 %v1209_v28  ;;  %v1236_v28 = vld [vmem:[#allocation8 + $0x4] ss:$8 sps:$4 sm:$0xff]  }
 0x350   :  { %v946_v59 = vsel %vm943_vm2, %v941_v58, 0.0  ;;  %1148 = vmatprep.subr.bf16.mxu1 %v1210_v60  ;;  %876 = vmatprep.subr.bf16.mxu0 %v1236_v28 }
 0x351   :  { %950 = vst [vmem:[#allocation11 + $0x10] sm:$0xff] %v946_v59  ;;  %877 = vmatpush1.bf16.msra.mxu0 %v1234_v29 }
 0x353   :  { %1149 = vmatpush3.bf16.msra.mxu1 %v1210_v60 }
 0x354   :  { %1150 = vmatprep.subr.bf16.mxu1 %v1211_v61 }
 0x357   :  { %1151 = vmatpush3.bf16.msra.mxu1 %v1211_v61 }
 0x358   :  { %1152 = vmatprep.subr.bf16.mxu1 %v1212_v62 }
 0x35b   :  { %1153 = vmatpush3.bf16.msra.mxu1 %v1212_v62 }
 0x40e   :  { %v1144_v9 = vpop.f32.mrf.mxu1 }
 0x40f   :  { %v642_v15 = vadd.f32 %v1144_v9, %v1024_v11 }
 0x410   :  { %v633_v10 = vpop.f32.mrf.mxu1 }
 0x411   :  { %v634_v13 = vadd.f32 %v1024_v11, %v633_v10  ;;  %v650_v21 = vmax.f32 %v642_v15, 0.0 }
 0x412   :  { %v1145_v12 = vpop.f32.mrf.mxu1 }
 0x413   :  { %v645_v14 = vadd.f32 %v1145_v12, %v1024_v11  ;;  %v648_v19 = vmax.f32 %v634_v13, 0.0 }
 0x414   :  { %v636_v16 = vpop.f32.mrf.mxu1 }
 0x415   :  { %v637_v17 = vadd.f32 %v1024_v11, %v636_v16  ;;  %v651_v18 = vmax.f32 %v645_v14, 0.0 }
 0x417   :  { %v649_v20 = vmax.f32 %v637_v17, 0.0  ;;  %v653_v23 = vpack.c.bf16 %v651_v18, %v650_v21 }
 0x419   :  { %v652_v22 = vpack.c.bf16 %v649_v20, %v648_v19 }
 0x41b   :  { %1154 = vmatprep.mubr.msk.bf16.mxu1 %vm471_vm0, %v652_v22 }
 0x41c   :  { %1155 = vmatmul.mubr.msk.bf16.vlgmr.msra.gmra.mxu1 %vm471_vm0, %v653_v23 }
 0x4dc   :  { %v1156_v31 = vpop.f32.mrf.mxu1 }
 0x4dd   :  { %v742_v42 = vadd.f32 %v1156_v31, %v1029_v33 }
 0x4de   :  { %v733_v32 = vpop.f32.mrf.mxu1 }
 0x4df   :  { %v734_v35 = vadd.f32 %v1029_v33, %v733_v32  ;;  %v750_v44 = vmax.f32 %v742_v42, 0.0 }
 0x4e0   :  { %v1157_v34 = vpop.f32.mrf.mxu1 }
 0x4e1   :  { %v748_v38 = vmax.f32 %v734_v35, 0.0  ;;  %v745_v40 = vadd.f32 %v1157_v34, %v1029_v33 }
 0x4e2   :  { %v736_v36 = vpop.f32.mrf.mxu1 }
 0x4e3   :  { %v737_v37 = vadd.f32 %v1029_v33, %v736_v36  ;;  %v751_v43 = vmax.f32 %v745_v40, 0.0 }
 0x4e5   :  { %v749_v39 = vmax.f32 %v737_v37, 0.0  ;;  %v753_v45 = vpack.c.bf16 %v751_v43, %v750_v44 }
 0x4e7   :  { %v752_v41 = vpack.c.bf16 %v749_v39, %v748_v38 }
 0x4e9   :  { %895 = vmatmul.mubr.bf16.vlgmr.msra.gmra.mxu0 %v752_v41 }
 0x4ea   :  { %904 = vmatprep.mubr.bf16.mxu0 %v1385_v30 }
 0x4f1   :  { %905 = vmatmul.mubr.bf16.gmra.mxu0 %v753_v45 }
 0x4f2   :  { %1336 = shalt.err (!%p1333_p10)
}
 0x4f3   :  { %975 = dma.vmem_to_hbm [thread:$0]  %s970_s17, 512, %s1571_s10, [#allocation12], %s1381_s2, %s1381_s2, %s1382_s12   ;;  %v772_v46 = vlaneseq }
 0x4f4   :  { %v770_v49 = vld [vmem:[%s1569_s8 + $0x5] sm:$0x3]  ;;  %s1387_s8 = smov [#allocation10]  }
 0x4f5   :  { %v773_v47 = vshrl.u32 %v772_v46, 7  ;;  %s957_s10 = sshll.u32 %s1387_s8, 4  ;;  %s958_s10 = int_to_ptr.vmem [resolvable:$true] %s957_s10 }
 0x4f6   :  { %s1345_s2 = scalar_lea.vmem %s958_s10, 1024  ;;  %p1350_p12 = scmp.lt.s32.totalorder %s958_s10, %s958_s10 }
 0x4f7   :  { %v774_v48 = vsub.s32 0, %v773_v47  ;;  %v778_v50 = vsub.s32 1, %v773_v47  ;;  %p1346_p11 = scmp.ne.s32.totalorder %s958_s10, %s1345_s2  ;;  %p1351_p13 = scmp.lt.s32.totalorder %s1345_s2, %s1345_s2 }
 0x4f9   :  { %v775_v51 = vrot.slane %v770_v49, %v774_v48  ;;  %v779_v52 = vrot.slane %v770_v49, %v778_v50  ;;  %p1352_p0 = por %p1351_p13, %p1350_p12 }
 0x4fb   :  { %p1353_p1 = pnand %p1352_p0, %p1346_p11 }
 0x5a9   :  { %v896_v53 = vpop.f32.mrf.mxu0 }
 0x5aa   :  { %v897_v54 = vadd.f32 %v896_v53, %v775_v51 }
 0x5ab   :  { %v898_v55 = vpop.f32.mrf.mxu0 }
 0x5ac   :  { %915 = vst [vmem:[#allocation10] sm:$0xff] %v897_v54  ;;  %v899_v56 = vadd.f32 %v898_v55, %v779_v52 }
 0x5ad   :  { %v900_v57 = vpop.f32.mrf.mxu0 }
 0x5ae   :  { %916 = vst [vmem:[#allocation10 + $0x8] sm:$0xff] %v899_v56  ;;  %v901_v58 = vadd.f32 %v900_v57, %v775_v51 }
 0x5af   :  { %v902_v59 = vpop.f32.mrf.mxu0 }
 0x5b0   :  { %917 = vst [vmem:[#allocation10 + $0x10] sm:$0xff] %v901_v58  ;;  %v903_v60 = vadd.f32 %v902_v59, %v779_v52 }
 0x5b1   :  { %v906_v61 = vpop.f32.mrf.mxu0 }
 0x5b2   :  { %918 = vst [vmem:[#allocation10 + $0x18] sm:$0xff] %v903_v60  ;;  %v907_v62 = vadd.f32 %v906_v61, %v775_v51 }
 0x5b3   :  { %v908_v63 = vpop.f32.mrf.mxu0 }
 0x5b4   :  { %919 = vst [vmem:[#allocation10 + $0x20] sm:$0xff] %v907_v62  ;;  %v909_v0 = vadd.f32 %v908_v63, %v779_v52 }
 0x5b5   :  { %v910_v1 = vpop.f32.mrf.mxu0 }
 0x5b6   :  { %920 = vst [vmem:[#allocation10 + $0x28] sm:$0xff] %v909_v0  ;;  %v911_v2 = vadd.f32 %v910_v1, %v775_v51 }
 0x5b7   :  { %v912_v3 = vpop.f32.mrf.mxu0 }
 0x5b8   :  { %921 = vst [vmem:[#allocation10 + $0x30] sm:$0xff] %v911_v2  ;;  %v913_v4 = vadd.f32 %v912_v3, %v779_v52 }
 0x5ba   :  { %922 = vst [vmem:[#allocation10 + $0x38] sm:$0xff] %v913_v4 }
 0x5bb   :  { %1356 = shalt.err (!%p1353_p1)
}
 0x5bc   :  { %s1388_s12 = smov 256   ;;  %s1389_s22 = smov 16  }
 0x5bd   :  { %963 = dma.vmem_to_hbm [thread:$0]  %s958_s10, 1024, %s1570_s9, [#allocation4], %s1388_s12, %s1388_s12, %s1389_s22  }
 0x5be   :  { %1371 = dma.done.wait [#allocation4], 1024  }
 0x5bf   :  { %1372 = vsyncadd [#allocation4], 4294966272 }
 0x5c0   :  { %1373 = dma.done.wait [#allocation12], 512  }
 0x5c1   :  { %1374 = vsyncadd [#allocation12], 4294966784 }
 0x5c2   :  { %982 = vsyncpa [#allocation3], 1 }
 0x5c3   :  { %983 = vsyncpa [#allocation6], 1 }
 0x5c4   :  { %984 = vsyncpa [#allocation9], 1 }
 0x5c5   :  { %985 = vsyncpa [#allocation4], 1 }
 0x5c6   :  { %986 = vsyncpa [#allocation12], 1 }

</bundles_post_ra>
